<compile_context>
chip_gen: v7x
topology: tpu7x:2x2x1
jax: 0.10.0
libtpu: 0.0.40
codegen_flags: <defaults>
</compile_context>

<pallas_src>
import functools

import jax
import jax.numpy as jnp
from jax.experimental import pallas as pl
from jax.experimental.pallas import tpu as pltpu


def _dropout2d_kernel(x_ref, scale_ref, o_ref):
    # scale_ref is (block_rows, 1): 0.0 for dropped channels, 1/(1-p) for kept
    # ones, already in the input dtype.  Broadcast over the lane-dense H*W
    # axis -> one wide VPU multiply, wide unmasked stores, no cast passes.
    o_ref[...] = x_ref[...] * scale_ref[...]


@functools.partial(jax.jit, static_argnames=("p", "training", "inplace"))
def p3_dropout2d(x, key, *, p=0.5, training=True, inplace=False):
    """Channel-wise dropout on an NCHW tensor (matches nn.Dropout2d forward)."""
    if not training or p == 0.0:
        return x
    if p >= 1.0:
        return jnp.zeros_like(x)

    n, c, h, w = x.shape
    rows, cols = n * c, h * w
    keep_prob = 1.0 - float(p)
    itemsize = jnp.dtype(x.dtype).itemsize
    total_bytes = rows * cols * itemsize

    # Per-(n, c) channel keep mask + scale, computed outside the kernel
    # (N*C values -> negligible), keeping the kernel purely HBM-streaming.
    keep = jax.random.bernoulli(key, p=keep_prob, shape=(rows,))
    scale = (keep.astype(jnp.float32) * jnp.float32(1.0 / keep_prob)).astype(x.dtype)
    scale2 = scale.reshape(rows, 1)

    x2 = x.reshape(rows, cols)  # each row = one (n, c) channel, lane-dense

    # ~8 MiB blocks: 2 inputs'/outputs' double buffers ~= 4x block = 32 MiB,
    # under the explicit 48 MiB scoped-VMEM limit below (safe on v7x's 64 MiB
    # physical VMEM, comfortable on v5e/v6e's 128 MiB).
    target_bytes = 8 << 20

    if 8 * cols * itemsize > target_bytes:
        # Extremely wide channels (e.g. 1024x1024 f32 = 4 MiB/row): tile the
        # column axis too so the block stays ~8 MiB.  block_cols is a multiple
        # of 128 (lane-aligned); the partial boundary block is handled by the
        # pipeline.  This branch always yields >= 2 grid steps.
        block_rows = min(rows, 8)
        block_cols = max(128, (target_bytes // (8 * itemsize)) // 128 * 128)
    else:
        block_cols = cols
        if rows <= 8:
            block_rows = rows
        else:
            block_rows = max(
                8, min(rows, (target_bytes // (cols * itemsize)) // 8 * 8)
            )
            if total_bytes > (2 << 20):
                # Guarantee >= 2 grid steps so v7x's two TensorCores both get
                # work under the "parallel" axis (no-op on 1-TC v5e/v6e).
                half = max(8, ((rows + 1) // 2) // 8 * 8)
                block_rows = min(block_rows, half)

    grid = (pl.cdiv(rows, block_rows), pl.cdiv(cols, block_cols))

    extra = {}
    if inplace:
        # Output reuses x's HBM buffer when the caller donates x; otherwise
        # XLA inserts a defensive copy (still correct).
        extra["input_output_aliases"] = {0: 0}

    out2 = pl.pallas_call(
        _dropout2d_kernel,
        out_shape=jax.ShapeDtypeStruct((rows, cols), x.dtype),
        grid=grid,
        in_specs=[
            pl.BlockSpec((block_rows, block_cols), lambda i, j: (i, j)),
            pl.BlockSpec((block_rows, 1), lambda i, j: (i, 0)),
        ],
        out_specs=pl.BlockSpec((block_rows, block_cols), lambda i, j: (i, j)),
        compiler_params=pltpu.CompilerParams(
            dimension_semantics=("parallel", "parallel"),
            vmem_limit_bytes=48 << 20,
        ),
        cost_estimate=pl.CostEstimate(
            flops=x.size,
            transcendentals=0,
            bytes_accessed=2 * x.size * itemsize,
        ),
        **extra,
    )(x2, scale2)

    return out2.reshape(n, c, h, w)


if __name__ == "__main__":
    root = jax.random.PRNGKey(0)
    kx, kd = jax.random.split(root)
    x = jax.random.normal(kx, (2, 4, 16, 16), dtype=jnp.float32)
    p = 0.5

    y = jax.block_until_ready(p3_dropout2d(x, kd, p=p, training=True))
    assert y.shape == x.shape and y.dtype == x.dtype

    # Structural check: every (n, c) channel is either entirely zeroed or
    # exactly the input channel scaled by 1/(1-p).
    scale = 1.0 / (1.0 - p)
    xc = x.reshape(-1, 16 * 16)
    yc = y.reshape(-1, 16 * 16)
    for i in range(xc.shape[0]):
        zeroed = bool(jnp.all(yc[i] == 0.0))
        scaled = bool(jnp.allclose(yc[i], xc[i] * scale, rtol=1e-6, atol=1e-6))
        assert zeroed or scaled, f"channel {i} is neither dropped nor scaled"

    # inplace=True path (same key -> same mask; exercises input_output_aliases).
    y_inpl = jax.block_until_ready(
        p3_dropout2d(x, kd, p=p, training=True, inplace=True)
    )
    assert bool(jnp.array_equal(y_inpl, y))

    # Eval mode is the identity.
    y_eval = jax.block_until_ready(p3_dropout2d(x, kd, p=p, training=False))
    assert bool(jnp.array_equal(y_eval, x))

    print("KERNEL_OK")
</pallas_src>

<mosaic_0001>
module attributes {stable_mosaic.version = 11 : i64} {
  func.func @_dropout2d_kernel(%arg0: i32, %arg1: i32, %arg2: memref<8x256xf32, #tpu.memory_space<vmem>>, %arg3: memref<8x1xf32, #tpu.memory_space<vmem>>, %arg4: memref<8x256xf32, #tpu.memory_space<vmem>>) attributes {dimension_semantics = [#tpu.dimension_semantics<parallel>, #tpu.dimension_semantics<parallel>], iteration_bounds = array<i64: 1, 1>, scalar_prefetch = 0 : i64, scratch_operands = 0 : i64, tpu.core_type = #tpu.core_type<tc>, window_params = [{transform_indices = @transform_0, window_bounds = array<i64: 8, 256>}, {transform_indices = @transform_1, window_bounds = array<i64: 8, 1>}, {transform_indices = @transform_2, window_bounds = array<i64: 8, 256>}]} {
    %c0 = arith.constant 0 : index
    %c0_0 = arith.constant 0 : index
    %0 = vector.load %arg2[%c0, %c0_0] : memref<8x256xf32, #tpu.memory_space<vmem>>, vector<8x256xf32>
    %c0_1 = arith.constant 0 : index
    %c0_2 = arith.constant 0 : index
    %1 = vector.load %arg3[%c0_1, %c0_2] : memref<8x1xf32, #tpu.memory_space<vmem>>, vector<8x1xf32>
    %2 = vector.broadcast %1 : vector<8x1xf32> to vector<8x256xf32>
    %3 = arith.mulf %0, %2 : vector<8x256xf32>
    %c0_3 = arith.constant 0 : index
    %c0_4 = arith.constant 0 : index
    %4 = vector.load %arg4[%c0_3, %c0_4] : memref<8x256xf32, #tpu.memory_space<vmem>>, vector<8x256xf32>
    tpu.vector_store %arg4[%c0_3, %c0_4], %3 {strides = array<i32>} : memref<8x256xf32, #tpu.memory_space<vmem>>, vector<8x256xf32>,
    return
  }
  func.func @transform_0(%arg0: i32, %arg1: i32) -> (i32, i32) {
    %c0_i32 = arith.constant 0 : i32
    return %arg0, %arg1 : i32, i32
  }
  func.func @transform_1(%arg0: i32, %arg1: i32) -> (i32, i32) {
    %c0_i32 = arith.constant 0 : i32
    %c0_i32_0 = arith.constant 0 : i32
    return %arg0, %c0_i32 : i32, i32
  }
  func.func @transform_2(%arg0: i32, %arg1: i32) -> (i32, i32) {
    %c0_i32 = arith.constant 0 : i32
    return %arg0, %arg1 : i32, i32
  }
}

</mosaic_0001>

<bundles_post_ra>
// kernel: p3_dropout2d.1
= control target key start
LH: loop header
LB: loop body
LE: loop exit
PB: predicated region body
PF: predicated region fallthrough
CT: control target
= control target key end

     0   :  { %v29_v0 = vmov 0   ;;  %s60_s1 = inlined_call_operand.vmem [shape: f32[8,1], index: 1, kind: input, shape index: {}]   ;;  %s61_s0 = inlined_call_operand.vmem [shape: f32[8,256], index: 0, kind: input, shape index: {}]   ;;  %s62_s2 = inlined_call_operand.vmem [shape: f32[8,256], index: 2, kind: output, shape index: {}]  }
   0x1   :  { %28 = vset.pattern.permute.xlu0 %v29_v0  ;;  %v13_v1 = vld [vmem:[%s60_s1] sm:$0xff]  ;;  %v12_v3 = vld [vmem:[%s61_s0 + $0x8] sm:$0xff] }
   0x2   :  { %16 = vperm.xlu0 %28, %v13_v1   ;;  %v11_v2 = vld [vmem:[%s61_s0] sm:$0xff] }
  0x81   :  { %v17_v4 = vpop.permute.xlu0 %16 }
  0x82   :  { %v19_v5 = vmul.f32 %v17_v4, %v11_v2  ;;  %v20_v6 = vmul.f32 %v17_v4, %v12_v3 }
  0x84   :  { %21 = vst [vmem:[%s62_s2] sm:$0xff] %v19_v5  ;;  %22 = vst [vmem:[%s62_s2 + $0x8] sm:$0xff] %v20_v6 }

</bundles_post_ra>
